<compile_context>
chip_gen: v5e
topology: v5e:2x2
jax: 0.10.0
libtpu: 0.0.40
codegen_flags: <defaults>
</compile_context>

<pallas_src>
import functools

import jax
import jax.numpy as jnp
from jax.experimental import pallas as pl
from jax.experimental.pallas import tpu as pltpu


def policy_net_kernel(x_ref, w1_ref, b1_ref, w2_ref, b2_ref, w3_ref, b3_ref,
                      probs_ref):
    x = x_ref[...]

    # Layer 1: Linear + Tanh  (bf16 MXU inputs, f32 accumulate + f32 tanh)
    h1 = jnp.tanh(
        jnp.dot(x.astype(jnp.bfloat16), w1_ref[...],
                preferred_element_type=jnp.float32)
        + b1_ref[...]
    )
    # Layer 2: Linear + Tanh
    h2 = jnp.tanh(
        jnp.dot(h1.astype(jnp.bfloat16), w2_ref[...],
                preferred_element_type=jnp.float32)
        + b2_ref[...]
    )
    # Layer 3: Linear -> logits (f32).  Padded action columns carry a -1e30
    # bias so they contribute exactly 0 probability after softmax.
    logits = (
        jnp.dot(h2.astype(jnp.bfloat16), w3_ref[...],
                preferred_element_type=jnp.float32)
        + b3_ref[...]
    )

    # Numerically stable softmax over last dim, matching nn.Softmax(dim=-1).
    m = jnp.max(logits, axis=-1, keepdims=True)
    e = jnp.exp(logits - m)
    s = jnp.sum(e, axis=-1, keepdims=True)
    # Divide -> EUP reciprocal (keeps the VALU slot free).
    probs_ref[...] = (e * pl.reciprocal(s, approx=True)).astype(probs_ref.dtype)


def _round_up(x, m):
    return ((x + m - 1) // m) * m


@functools.partial(jax.jit, static_argnames=("tb_max",))
def policy_net_forward(state, params, *, tb_max=1024):
    """Returns the Categorical probabilities for each row of `state`.

    state: (B, state_dim) float32
    params: dict with w1 (S,H), b1 (1,H), w2 (H,H), b2 (1,H), w3 (H,A), b3 (1,A)
    """
    B, S = state.shape
    H = params["w1"].shape[1]
    A = params["w3"].shape[1]

    # bf16 weights for the MXU; biases stay f32.
    w1 = params["w1"].astype(jnp.bfloat16)
    w2 = params["w2"].astype(jnp.bfloat16)
    w3 = params["w3"].astype(jnp.bfloat16)
    b1, b2, b3 = params["b1"], params["b2"], params["b3"]

    # Lane-dense output: pad the action dim to a multiple of 128.
    # Pad weight columns = 0, pad bias = -1e30  -> softmax prob exactly 0.
    Ap = _round_up(A, 128)
    if Ap != A:
        w3 = jnp.pad(w3, ((0, 0), (0, Ap - A)))
        b3 = jnp.pad(b3, ((0, 0), (0, Ap - A)), constant_values=-1e30)

    # Batch tile: large to amortize per-grid-step overhead, multiple of 8
    # (sublane), capped at tb_max. Pad B up to a whole number of tiles.
    TB = min(tb_max, _round_up(B, 8))
    Bp = _round_up(B, TB)
    if Bp != B:
        state = jnp.pad(state, ((0, Bp - B), (0, 0)))
    grid = (Bp // TB,)

    flops = 2 * B * (S * H + H * H + H * A)
    transcendentals = B * (2 * H + A)          # tanh, tanh, exp
    weight_bytes = (S * H + H * H + H * Ap) * 2 + (2 * H + Ap) * 4
    bytes_accessed = 4 * B * (S + Ap) + weight_bytes

    out = pl.pallas_call(
        policy_net_kernel,
        out_shape=jax.ShapeDtypeStruct((Bp, Ap), jnp.float32),
        grid=grid,
        in_specs=[
            pl.BlockSpec((TB, S), lambda i: (i, 0)),   # state: tiled over batch
            pl.BlockSpec((S, H), lambda i: (0, 0)),    # w1: resident
            pl.BlockSpec((1, H), lambda i: (0, 0)),    # b1: resident
            pl.BlockSpec((H, H), lambda i: (0, 0)),    # w2: resident
            pl.BlockSpec((1, H), lambda i: (0, 0)),    # b2: resident
            pl.BlockSpec((H, Ap), lambda i: (0, 0)),   # w3: resident (padded)
            pl.BlockSpec((1, Ap), lambda i: (0, 0)),   # b3: resident (padded)
        ],
        out_specs=pl.BlockSpec((TB, Ap), lambda i: (i, 0)),
        compiler_params=pltpu.CompilerParams(
            dimension_semantics=("parallel",)),
        cost_estimate=pl.CostEstimate(
            flops=flops,
            transcendentals=transcendentals,
            bytes_accessed=bytes_accessed),
    )(state, w1, b1, w2, b2, w3, b3)

    if Bp != B or Ap != A:
        out = out[:B, :A]
    return out


def init_params(key, state_dim, action_dim, hidden_size=64):
    """Deterministic init mimicking PyTorch nn.Linear default:
    U(-1/sqrt(fan_in), 1/sqrt(fan_in))."""
    def linear_init(k, fan_in, fan_out):
        kw, kb = jax.random.split(k)
        bound = 1.0 / jnp.sqrt(jnp.float32(fan_in))
        w = jax.random.uniform(kw, (fan_in, fan_out), jnp.float32,
                               -bound, bound)
        b = jax.random.uniform(kb, (1, fan_out), jnp.float32, -bound, bound)
        return w, b

    k1, k2, k3 = jax.random.split(key, 3)
    w1, b1 = linear_init(k1, state_dim, hidden_size)
    w2, b2 = linear_init(k2, hidden_size, hidden_size)
    w3, b3 = linear_init(k3, hidden_size, action_dim)
    return {"w1": w1, "b1": b1, "w2": w2, "b2": b2, "w3": w3, "b3": b3}


def policy_net_ref(state, p):
    """Pure-JAX reference with the same bf16-matmul / f32-elementwise recipe
    as the kernel (PyTorch-f32 semantics up to bf16 matmul precision)."""
    w1 = p["w1"].astype(jnp.bfloat16)
    w2 = p["w2"].astype(jnp.bfloat16)
    w3 = p["w3"].astype(jnp.bfloat16)
    h1 = jnp.tanh(jnp.dot(state.astype(jnp.bfloat16), w1,
                          preferred_element_type=jnp.float32) + p["b1"])
    h2 = jnp.tanh(jnp.dot(h1.astype(jnp.bfloat16), w2,
                          preferred_element_type=jnp.float32) + p["b2"])
    logits = jnp.dot(h2.astype(jnp.bfloat16), w3,
                     preferred_element_type=jnp.float32) + p["b3"]
    return jax.nn.softmax(logits, axis=-1)


if __name__ == "__main__":
    key = jax.random.PRNGKey(0)
    k_params, k_state, k_state2 = jax.random.split(key, 3)

    batch, state_dim, action_dim, hidden = 8, 16, 6, 64
    params = init_params(k_params, state_dim, action_dim, hidden)
    state = jax.random.normal(k_state, (batch, state_dim), jnp.float32)

    # Single small-batch call (grid = 1 tile).
    probs = policy_net_forward(state, params)
    probs = jax.block_until_ready(probs)
    ref = policy_net_ref(state, params)
    assert probs.shape == (batch, action_dim)
    assert jnp.allclose(probs, ref, atol=5e-3, rtol=1e-2)
    assert jnp.allclose(jnp.sum(probs, axis=-1), 1.0, atol=5e-3)

    # Larger batch exercising the batch grid + tail padding path
    # (B=200, TB=64 -> padded to 256 rows, grid=(4,)).
    big_b = 200
    state_big = jax.random.normal(k_state2, (big_b, state_dim), jnp.float32)
    probs_big = jax.block_until_ready(
        policy_net_forward(state_big, params, tb_max=64))
    ref_big = policy_net_ref(state_big, params)
    assert probs_big.shape == (big_b, action_dim)
    assert jnp.allclose(probs_big, ref_big, atol=5e-3, rtol=1e-2)
    assert jnp.allclose(jnp.sum(probs_big, axis=-1), 1.0, atol=5e-3)

    # NOTE: Categorical(dist) sampling / log_prob is trivial JAX glue on top
    # of these probabilities and is not part of the kernel hot path.
    print("KERNEL_OK")
</pallas_src>

<mosaic_0001>
module attributes {stable_mosaic.version = 11 : i64} {
  func.func @policy_net_kernel(%arg0: i32, %arg1: memref<8x16xf32, #tpu.memory_space<vmem>>, %arg2: memref<16x64xbf16, #tpu.memory_space<vmem>>, %arg3: memref<1x64xf32, #tpu.memory_space<vmem>>, %arg4: memref<64x64xbf16, #tpu.memory_space<vmem>>, %arg5: memref<1x64xf32, #tpu.memory_space<vmem>>, %arg6: memref<64x128xbf16, #tpu.memory_space<vmem>>, %arg7: memref<1x128xf32, #tpu.memory_space<vmem>>, %arg8: memref<8x128xf32, #tpu.memory_space<vmem>>) attributes {dimension_semantics = [#tpu.dimension_semantics<parallel>], iteration_bounds = array<i64: 1>, scalar_prefetch = 0 : i64, scratch_operands = 0 : i64, tpu.core_type = #tpu.core_type<tc>, window_params = [{transform_indices = @transform_0, window_bounds = array<i64: 8, 16>}, {pipeline_mode = #tpu.pipeline_mode<synchronous>, transform_indices = @transform_1, window_bounds = array<i64: 16, 64>}, {pipeline_mode = #tpu.pipeline_mode<synchronous>, transform_indices = @transform_2, window_bounds = array<i64: 1, 64>}, {pipeline_mode = #tpu.pipeline_mode<synchronous>, transform_indices = @transform_3, window_bounds = array<i64: 64, 64>}, {pipeline_mode = #tpu.pipeline_mode<synchronous>, transform_indices = @transform_4, window_bounds = array<i64: 1, 64>}, {pipeline_mode = #tpu.pipeline_mode<synchronous>, transform_indices = @transform_5, window_bounds = array<i64: 64, 128>}, {pipeline_mode = #tpu.pipeline_mode<synchronous>, transform_indices = @transform_6, window_bounds = array<i64: 1, 128>}, {transform_indices = @transform_7, window_bounds = array<i64: 8, 128>}]} {
    %c0 = arith.constant 0 : index
    %c0_0 = arith.constant 0 : index
    %0 = vector.load %arg1[%c0, %c0_0] : memref<8x16xf32, #tpu.memory_space<vmem>>, vector<8x16xf32>
    %1 = arith.truncf %0 : vector<8x16xf32> to vector<8x16xbf16>
    %c0_1 = arith.constant 0 : index
    %c0_2 = arith.constant 0 : index
    %2 = vector.load %arg2[%c0_1, %c0_2] : memref<16x64xbf16, #tpu.memory_space<vmem>>, vector<16x64xbf16>
    %cst = arith.constant dense<0.000000e+00> : vector<8x64xf32>
    %3 = tpu.matmul %1, %2, %cst {dimension_numbers = #tpu.dot_dimension_numbers<[1], [0], [0], [1], [0, 0, 1, 1], [], []>} : vector<8x16xbf16>, vector<16x64xbf16>, vector<8x64xf32> -> vector<8x64xf32>
    %c0_3 = arith.constant 0 : index
    %c0_4 = arith.constant 0 : index
    %4 = vector.load %arg3[%c0_3, %c0_4] : memref<1x64xf32, #tpu.memory_space<vmem>>, vector<1x64xf32>
    %5 = vector.broadcast %4 : vector<1x64xf32> to vector<8x64xf32>
    %6 = arith.addf %3, %5 : vector<8x64xf32>
    %7 = math.tanh %6 : vector<8x64xf32>
    %8 = arith.truncf %7 : vector<8x64xf32> to vector<8x64xbf16>
    %c0_5 = arith.constant 0 : index
    %c0_6 = arith.constant 0 : index
    %9 = vector.load %arg4[%c0_5, %c0_6] : memref<64x64xbf16, #tpu.memory_space<vmem>>, vector<64x64xbf16>
    %cst_7 = arith.constant dense<0.000000e+00> : vector<8x64xf32>
    %10 = tpu.matmul %8, %9, %cst_7 {dimension_numbers = #tpu.dot_dimension_numbers<[1], [0], [0], [1], [0, 0, 1, 1], [], []>} : vector<8x64xbf16>, vector<64x64xbf16>, vector<8x64xf32> -> vector<8x64xf32>
    %c0_8 = arith.constant 0 : index
    %c0_9 = arith.constant 0 : index
    %11 = vector.load %arg5[%c0_8, %c0_9] : memref<1x64xf32, #tpu.memory_space<vmem>>, vector<1x64xf32>
    %12 = vector.broadcast %11 : vector<1x64xf32> to vector<8x64xf32>
    %13 = arith.addf %10, %12 : vector<8x64xf32>
    %14 = math.tanh %13 : vector<8x64xf32>
    %15 = arith.truncf %14 : vector<8x64xf32> to vector<8x64xbf16>
    %c0_10 = arith.constant 0 : index
    %c0_11 = arith.constant 0 : index
    %16 = vector.load %arg6[%c0_10, %c0_11] : memref<64x128xbf16, #tpu.memory_space<vmem>>, vector<64x128xbf16>
    %cst_12 = arith.constant dense<0.000000e+00> : vector<8x128xf32>
    %17 = tpu.matmul %15, %16, %cst_12 {dimension_numbers = #tpu.dot_dimension_numbers<[1], [0], [0], [1], [0, 0, 1, 1], [], []>} : vector<8x64xbf16>, vector<64x128xbf16>, vector<8x128xf32> -> vector<8x128xf32>
    %c0_13 = arith.constant 0 : index
    %c0_14 = arith.constant 0 : index
    %18 = vector.load %arg7[%c0_13, %c0_14] : memref<1x128xf32, #tpu.memory_space<vmem>>, vector<1x128xf32>
    %19 = vector.broadcast %18 : vector<1x128xf32> to vector<8x128xf32>
    %20 = arith.addf %17, %19 : vector<8x128xf32>
    %cst_15 = arith.constant dense<0xFF800000> : vector<8xf32>
    %21 = vector.multi_reduction <maximumf>, %20, %cst_15 [1] : vector<8x128xf32> to vector<8xf32>
    %22 = vector.shape_cast %21 : vector<8xf32> to vector<8x1xf32>
    %23 = vector.broadcast %22 : vector<8x1xf32> to vector<8x128xf32>
    %24 = arith.subf %20, %23 : vector<8x128xf32>
    %25 = math.exp %24 : vector<8x128xf32>
    %cst_16 = arith.constant dense<0.000000e+00> : vector<8xf32>
    %26 = vector.multi_reduction <add>, %25, %cst_16 [1] : vector<8x128xf32> to vector<8xf32>
    %27 = vector.shape_cast %26 : vector<8xf32> to vector<8x1xf32>
    %28 = tpu.reciprocal %27 {approx = true} : vector<8x1xf32> -> vector<8x1xf32>
    %29 = vector.broadcast %28 : vector<8x1xf32> to vector<8x128xf32>
    %30 = arith.mulf %25, %29 : vector<8x128xf32>
    %c0_17 = arith.constant 0 : index
    %c0_18 = arith.constant 0 : index
    %31 = vector.load %arg8[%c0_17, %c0_18] : memref<8x128xf32, #tpu.memory_space<vmem>>, vector<8x128xf32>
    tpu.vector_store %arg8[%c0_17, %c0_18], %30 {strides = array<i32>} : memref<8x128xf32, #tpu.memory_space<vmem>>, vector<8x128xf32>,
    return
  }
  func.func @transform_0(%arg0: i32) -> (i32, i32) {
    %c0_i32 = arith.constant 0 : i32
    %c0_i32_0 = arith.constant 0 : i32
    return %arg0, %c0_i32 : i32, i32
  }
  func.func @transform_1(%arg0: i32) -> (i32, i32) {
    %c0_i32 = arith.constant 0 : i32
    %c0_i32_0 = arith.constant 0 : i32
    %c0_i32_1 = arith.constant 0 : i32
    return %c0_i32, %c0_i32_0 : i32, i32
  }
  func.func @transform_2(%arg0: i32) -> (i32, i32) {
    %c0_i32 = arith.constant 0 : i32
    %c0_i32_0 = arith.constant 0 : i32
    %c0_i32_1 = arith.constant 0 : i32
    return %c0_i32, %c0_i32_0 : i32, i32
  }
  func.func @transform_3(%arg0: i32) -> (i32, i32) {
    %c0_i32 = arith.constant 0 : i32
    %c0_i32_0 = arith.constant 0 : i32
    %c0_i32_1 = arith.constant 0 : i32
    return %c0_i32, %c0_i32_0 : i32, i32
  }
  func.func @transform_4(%arg0: i32) -> (i32, i32) {
    %c0_i32 = arith.constant 0 : i32
    %c0_i32_0 = arith.constant 0 : i32
    %c0_i32_1 = arith.constant 0 : i32
    return %c0_i32, %c0_i32_0 : i32, i32
  }
  func.func @transform_5(%arg0: i32) -> (i32, i32) {
    %c0_i32 = arith.constant 0 : i32
    %c0_i32_0 = arith.constant 0 : i32
    %c0_i32_1 = arith.constant 0 : i32
    return %c0_i32, %c0_i32_0 : i32, i32
  }
  func.func @transform_6(%arg0: i32) -> (i32, i32) {
    %c0_i32 = arith.constant 0 : i32
    %c0_i32_0 = arith.constant 0 : i32
    %c0_i32_1 = arith.constant 0 : i32
    return %c0_i32, %c0_i32_0 : i32, i32
  }
  func.func @transform_7(%arg0: i32) -> (i32, i32) {
    %c0_i32 = arith.constant 0 : i32
    %c0_i32_0 = arith.constant 0 : i32
    return %arg0, %c0_i32 : i32, i32
  }
}

</mosaic_0001>

<bundles_post_ra>
// kernel: policy_net_forward.1
= control target key start
LH: loop header
LB: loop body
LE: loop exit
PB: predicated region body
PF: predicated region fallthrough
CT: control target
= control target key end

     0   :  { %vm42_vm0 = vcmask 130048   ;;  %s365_s0 = inlined_call_operand.vmem [shape: f32[8,16], index: 0, kind: input, shape index: {}]   ;;  %s366_s1 = inlined_call_operand.vmem [shape: bf16[16,64], index: 1, kind: input, shape index: {}]   ;;  %s367_s2 = inlined_call_operand.vmem [shape: f32[1,64], index: 2, kind: input, shape index: {}]   ;;  %s368_s3 = inlined_call_operand.vmem [shape: bf16[64,64], index: 3, kind: input, shape index: {}]   ;;  %s369_s4 = inlined_call_operand.vmem [shape: f32[1,64], index: 4, kind: input, shape index: {}]   ;;  %s370_s5 = inlined_call_operand.vmem [shape: bf16[64,128], index: 5, kind: input, shape index: {}]   ;;  %s371_s6 = inlined_call_operand.vmem [shape: f32[1,128], index: 6, kind: input, shape index: {}]   ;;  %s372_s7 = inlined_call_operand.hbm [shape: f32[8,128], index: 7, kind: output, shape index: {}]  }
   0x1   :  { %v233_v0 = vld [vmem:[%s366_s1] sm:$0xff]  ;;  %v237_v2 = vld [vmem:[%s368_s3 + $0x18] sm:$0xff] }
   0x2   :  { %v28_v1 = vld [vmem:[%s365_s0] sm:$0xff]  ;;  %53 = vmatpush.bf16.msra.mxu0 %v233_v0  ;;  %105 = vmatpush.bf16.msra.mxu1 %v237_v2 }
   0x3   :  { %v29_v3 = vpack.c.bf16 %v28_v1, %v28_v1 }
   0x4   :  { %12 = vsyncpa [#allocation3], 0  ;;  %v236_v4 = vld [vmem:[%s368_s3 + $0x10] sm:$0xff]  ;;  %v235_v5 = vld [vmem:[%s368_s3 + $0x8] sm:$0xff]  ;;  %vm97_vm1 = vcmask 523264   ;;  %s185_s25 = sshll.u32 %s372_s7, 4  ;;  %s186_s25 = int_to_ptr.hbm [resolvable:$true] %s185_s25 }
   0x5   :  { %198 = vmatmul.msk.bf16.vlgmr.msra.gmra.mxu0 %vm42_vm0, %v29_v3  ;;  %v234_v6 = vld [vmem:[%s368_s3] sm:$0xff]  ;;  %v241_v7 = vld [vmem:[%s370_s5 + $0x18] sm:$0xff]  ;;  %v240_v14 = vld [vmem:[%s370_s5 + $0x10] sm:$0xff] }
   0x6   :  { %106 = vmatpush.bf16.msra.mxu1 %v236_v4  ;;  %159 = vmatpush.bf16.msra.mxu2 %v241_v7  ;;  %v243_v8 = vld [vmem:[%s367_s2] ss:$0 sm:$0xff]  ;;  %v239_v15 = vld [vmem:[%s370_s5 + $0x8] sm:$0xff] }
   0x7   :  { %v238_v16 = vld [vmem:[%s370_s5] sm:$0xff] }
   0x8   :  { %v244_v17 = vld [vmem:[%s369_s4] ss:$0 sm:$0xff]  ;;  %s280_s4 = smov [#allocation2]  }
   0x9   :  { %v245_v23 = vld [vmem:[%s371_s6] ss:$0 sm:$0xff]  ;;  %s183_s5 = sshll.u32 %s280_s4, 4  ;;  %s184_s5 = int_to_ptr.vmem [resolvable:$true] %s183_s5 }
   0xa   :  { %107 = vmatpush.bf16.msra.mxu1 %v235_v5  ;;  %160 = vmatpush.bf16.msra.mxu2 %v240_v14 }
   0xe   :  { %108 = vmatpush.bf16.msra.mxu1 %v234_v6  ;;  %161 = vmatpush.bf16.msra.mxu2 %v239_v15 }
  0x12   :  { %162 = vmatpush.bf16.msra.mxu2 %v238_v16 }
  0x82   :  { %v55_v9 = vpop.f32.mrf.mxu0 }
  0x83   :  { %v56_v10 = vadd.f32 %v243_v8, %v55_v9 }
  0x85   :  { %246 = vtanh.f32 %v56_v10 }
  0x8a   :  { %v57_v11 = vpop.f32.mrf.mxu0 }
  0x8b   :  { %v247_v12 = vpop.eup %246 }
  0x8c   :  { %v60_v13 = vpack.c.bf16 %v247_v12, %v247_v12 }
  0x8e   :  { %215 = vmatmul.msk.bf16.vlgmr.msra.gmra.mxu1 %vm97_vm1, %v60_v13 }
 0x10b   :  { %v110_v18 = vpop.f32.mrf.mxu1 }
 0x10c   :  { %v111_v19 = vadd.f32 %v244_v17, %v110_v18 }
 0x10e   :  { %248 = vtanh.f32 %v111_v19 }
 0x113   :  { %v112_v20 = vpop.f32.mrf.mxu1 }
 0x114   :  { %v249_v21 = vpop.eup %248 }
 0x115   :  { %v115_v22 = vpack.c.bf16 %v249_v21, %v249_v21 }
 0x117   :  { %232 = vmatmul.msk.bf16.vlgmr.msra.gmra.mxu2 %vm97_vm1, %v115_v22 }
 0x19a   :  { %v164_v24 = vpop.f32.mrf.mxu2 }
 0x19b   :  { %v165_v25 = vadd.f32 %v245_v23, %v164_v24 }
 0x19d   :  { %168 = vmax.xlane.f32.xlu0 %v165_v25 }
 0x1a2   :  { %v166_v26 = vpop.f32.mrf.mxu2 }
 0x210   :  { %v169_v27 = vpop.xlane.xlu0 %168 }
 0x211   :  { %v170_v28 = vsub.f32 %v165_v25, %v169_v27 }
 0x213   :  { %v171_v29 = vmul.f32 1.442695, %v170_v28 }
 0x215   :  { %250 = vpow2.f32 %v171_v29 }
 0x21b   :  { %v251_v30 = vpop.eup %250 }
 0x21c   :  { %173 = vadd.xlane.f32.xlu0 %v251_v30 }
 0x28f   :  { %v174_v31 = vpop.xlane.xlu0 %173 }
 0x290   :  { %252 = vrcp.f32 %v174_v31 }
 0x296   :  { %v253_v32 = vpop.eup %252 }
 0x297   :  { %v176_v33 = vmul.f32 %v253_v32, %v251_v30 }
 0x299   :  { %177 = vst [vmem:[#allocation2] sm:$0xff] %v176_v33 }
 0x29a   :  { %188 = dma.vmem_to_hbm [thread:$0]  %s184_s5, 128, %s186_s25, [#allocation3]  }
 0x29b   :  { %278 = dma.done.wait [#allocation3], 128  }
 0x29c   :  { %279 = vsyncadd [#allocation3], 4294967168 }
 0x29d   :  { %193 = vsyncpa [#allocation3], 1 }

</bundles_post_ra>
